<compile_context>
chip_gen: v5e
topology: v5e:2x2
jax: 0.10.0
libtpu: 0.0.40
codegen_flags: <defaults>
</compile_context>

<pallas_src>
import functools

import jax
import jax.numpy as jnp
from jax.experimental import pallas as pl
from jax.experimental.pallas import tpu as pltpu


# ----------------------------------------------------------------------------
# Kernel
# ----------------------------------------------------------------------------
def _head_kernel(x_ref, w_ref, b_ref, o_ref, *, inv_hw):
    # x_ref: [TB, C, HW]   w_ref: [C, O_pad]   b_ref: [1, O_pad]   o_ref: [TB, O_pad]
    # Global average pool: f32-accumulated sum along the lane (H*W) axis, then
    # scale only the small pooled tile by 1/(H*W).
    pooled = jnp.sum(x_ref[...], axis=-1, dtype=jnp.float32) * inv_hw     # [TB, C] f32
    pooled = pooled.astype(w_ref.dtype)                                   # MXU-native dtype
    # logits = pooled @ weight_co   (weight already [C, O_pad]: natural MXU RHS,
    # contraction on RHS dim 0 -> no in-kernel weight transpose)
    logits = jax.lax.dot_general(
        pooled, w_ref[...],
        dimension_numbers=(((1,), (0,)), ((), ())),
        preferred_element_type=jnp.float32)                               # [TB, O_pad] f32
    o_ref[...] = (logits + b_ref[...].astype(jnp.float32)).astype(o_ref.dtype)


# ----------------------------------------------------------------------------
# VMEM budgeting (generation-aware)
# ----------------------------------------------------------------------------
def _vmem_limit_bytes():
    """Explicit scoped-VMEM limit derived from the chip's physical VMEM.
    v7x: 64 MiB/TC -> ~56 MiB; v5e/v6e: 128 MiB -> ~112 MiB."""
    try:
        cap = int(pltpu.get_tpu_info().vmem_capacity_bytes)
    except Exception:
        cap = 64 << 20  # conservative default (v7x per-TC)
    return min(cap - (8 << 20), (cap * 7) // 8)


def _pick_batch_tile(B, x_row_bytes, out_row_bytes, C, O_pad, resident_bytes, vmem_limit):
    """Largest batch tile whose *total* resident VMEM (double-buffered x and out
    tiles, weight/bias buffers, f32 temps) stays under `vmem_limit`, with a
    multiple-of-8 constraint whenever the batch is actually tiled and a
    >=2-tile guarantee for large batches (v7x megacore)."""
    # Per-batch-row footprint across pipeline buffers + f32 pooled/logits temps.
    per_row = 2 * x_row_bytes + 2 * out_row_bytes + 4 * (C + O_pad)
    slack = 2 << 20
    avail = max(per_row, vmem_limit - resident_bytes - slack)
    tb = max(1, avail // per_row)

    if tb >= B:
        if B >= 16:
            # Force >= 2 even tiles (multiples of 8) so both v7x TCs get work.
            tb = max(8, ((B // 2) // 8) * 8)
        else:
            tb = B
    else:
        # TODO(synk): if x_row_bytes alone ever exceeds the budget (huge H*W*C per
        # row), add a second "arbitrary" grid axis over H*W with an f32 scratch
        # accumulator (P3) instead of clamping the tile up to 8.
        tb = min(B, max(8, (tb // 8) * 8))
    return int(tb)


# ----------------------------------------------------------------------------
# Parameter preparation (hoisted out of the per-call path)
# ----------------------------------------------------------------------------
def prepare_head_params(weight, bias):
    """weight: [O, C] (PyTorch Linear layout); bias: [O].
    Returns ([C, O_pad] weight, [1, O_pad] bias, O). Do this once per model."""
    O, C = weight.shape
    O_pad = pl.cdiv(O, 128) * 128
    w_co = jnp.pad(jnp.transpose(weight), ((0, 0), (0, O_pad - O)))   # [C, O_pad]
    b_p = jnp.pad(bias, (0, O_pad - O)).reshape(1, O_pad)             # [1, O_pad]
    return w_co, b_p, O


def _head_forward(x_nchw, w_co, b_p, O):
    B, C, H, W = x_nchw.shape
    Cw, O_pad = w_co.shape
    assert Cw == C, "weight in_channel mismatch"
    HW = H * W

    # Free reshape (NCHW is contiguous over H*W): no extra HBM traffic.
    x_bch = x_nchw.reshape(B, C, HW)

    x_row_bytes = C * HW * x_bch.dtype.itemsize
    out_row_bytes = O_pad * x_nchw.dtype.itemsize
    resident_bytes = 2 * (w_co.size * w_co.dtype.itemsize) + 2 * (b_p.size * b_p.dtype.itemsize)
    vmem_limit = _vmem_limit_bytes()

    tb = _pick_batch_tile(B, x_row_bytes, out_row_bytes, C, O_pad, resident_bytes, vmem_limit)
    grid = (pl.cdiv(B, tb),)

    cost = pl.CostEstimate(
        flops=2 * B * C * O_pad + B * HW * C,
        transcendentals=0,
        bytes_accessed=(x_bch.size * x_bch.dtype.itemsize
                        + w_co.size * w_co.dtype.itemsize
                        + b_p.size * b_p.dtype.itemsize
                        + B * O_pad * x_nchw.dtype.itemsize),
    )

    out_padded = pl.pallas_call(
        functools.partial(_head_kernel, inv_hw=1.0 / HW),
        out_shape=jax.ShapeDtypeStruct((B, O_pad), x_nchw.dtype),
        grid_spec=pltpu.PrefetchScalarGridSpec(
            num_scalar_prefetch=0,
            grid=grid,
            in_specs=[
                pl.BlockSpec((tb, C, HW), lambda i: (i, 0, 0)),   # streamed batch tiles
                pl.BlockSpec((C, O_pad), lambda i: (0, 0)),       # VMEM-resident weight
                pl.BlockSpec((1, O_pad), lambda i: (0, 0)),       # VMEM-resident bias
            ],
            out_specs=pl.BlockSpec((tb, O_pad), lambda i: (i, 0)),
        ),
        compiler_params=pltpu.CompilerParams(
            dimension_semantics=("parallel",),     # batch tiles independent -> megacore
            vmem_limit_bytes=int(vmem_limit)),
        cost_estimate=cost,
    )(x_bch, w_co, b_p)

    # Note: a partial last batch tile is safe because each output row depends
    # only on its own input row; OOB rows are masked on the output store.
    return out_padded[:, :O]


def base_classification_head(x_nchw, weight, bias):
    """x_nchw: [B, C, H, W]; weight: [O, C]; bias: [O]  ->  [B, O] logits."""
    w_co, b_p, O = prepare_head_params(weight, bias)
    return _head_forward(x_nchw, w_co, b_p, O)


if __name__ == "__main__":
    # Small shapes consistent with the module: batch=2, in_channel=4, 16x16 spatial, out_channel=8
    B, C, H, W, O = 2, 4, 16, 16, 8

    key = jax.random.PRNGKey(0)
    kx, kw, kb = jax.random.split(key, 3)

    x = jax.random.normal(kx, (B, C, H, W), dtype=jnp.float32)

    # Deterministic parameter init mimicking nn.Linear's U(-1/sqrt(C), 1/sqrt(C))
    bound = 1.0 / (C ** 0.5)
    weight = jax.random.uniform(kw, (O, C), dtype=jnp.float32, minval=-bound, maxval=bound)
    bias = jax.random.uniform(kb, (O,), dtype=jnp.float32, minval=-bound, maxval=bound)

    out = base_classification_head(x, weight, bias)
    out = jax.block_until_ready(out)

    # Pure-JAX reference (same semantics as the PyTorch forward)
    ref = jnp.mean(x, axis=(2, 3)) @ weight.T + bias
    assert out.shape == (B, O)
    assert jnp.allclose(out, ref, atol=1e-5, rtol=1e-5), "mismatch vs reference"

    print("KERNEL_OK")
</pallas_src>

<mosaic_0001>
module attributes {stable_mosaic.version = 11 : i64} {
  func.func @_head_kernel(%arg0: i32, %arg1: memref<2x4x256xf32, #tpu.memory_space<vmem>>, %arg2: memref<4x128xf32, #tpu.memory_space<vmem>>, %arg3: memref<1x128xf32, #tpu.memory_space<vmem>>, %arg4: memref<2x128xf32, #tpu.memory_space<vmem>>) attributes {dimension_semantics = [#tpu.dimension_semantics<parallel>], iteration_bounds = array<i64: 1>, scalar_prefetch = 0 : i64, scratch_operands = 0 : i64, tpu.core_type = #tpu.core_type<tc>, window_params = [{transform_indices = @transform_0, window_bounds = array<i64: 2, 4, 256>}, {pipeline_mode = #tpu.pipeline_mode<synchronous>, transform_indices = @transform_1, window_bounds = array<i64: 4, 128>}, {pipeline_mode = #tpu.pipeline_mode<synchronous>, transform_indices = @transform_2, window_bounds = array<i64: 1, 128>}, {transform_indices = @transform_3, window_bounds = array<i64: 2, 128>}]} {
    %c0 = arith.constant 0 : index
    %c0_0 = arith.constant 0 : index
    %c0_1 = arith.constant 0 : index
    %0 = vector.load %arg1[%c0, %c0_0, %c0_1] : memref<2x4x256xf32, #tpu.memory_space<vmem>>, vector<2x4x256xf32>
    %cst = arith.constant dense<0.000000e+00> : vector<2x4xf32>
    %1 = vector.multi_reduction <add>, %0, %cst [2] : vector<2x4x256xf32> to vector<2x4xf32>
    %cst_2 = arith.constant 3.906250e-03 : f32
    %2 = vector.broadcast %cst_2 : f32 to vector<2x4xf32>
    %3 = arith.mulf %1, %2 : vector<2x4xf32>
    %c0_3 = arith.constant 0 : index
    %c0_4 = arith.constant 0 : index
    %4 = vector.load %arg2[%c0_3, %c0_4] : memref<4x128xf32, #tpu.memory_space<vmem>>, vector<4x128xf32>
    %cst_5 = arith.constant dense<0.000000e+00> : vector<2x128xf32>
    %5 = tpu.matmul %3, %4, %cst_5 {dimension_numbers = #tpu.dot_dimension_numbers<[1], [0], [0], [1], [0, 0, 1, 1], [], []>} : vector<2x4xf32>, vector<4x128xf32>, vector<2x128xf32> -> vector<2x128xf32>
    %c0_6 = arith.constant 0 : index
    %c0_7 = arith.constant 0 : index
    %6 = vector.load %arg3[%c0_6, %c0_7] : memref<1x128xf32, #tpu.memory_space<vmem>>, vector<1x128xf32>
    %7 = vector.broadcast %6 : vector<1x128xf32> to vector<2x128xf32>
    %8 = arith.addf %5, %7 : vector<2x128xf32>
    %c0_8 = arith.constant 0 : index
    %c0_9 = arith.constant 0 : index
    %9 = vector.load %arg4[%c0_8, %c0_9] : memref<2x128xf32, #tpu.memory_space<vmem>>, vector<2x128xf32>
    tpu.vector_store %arg4[%c0_8, %c0_9], %8 {strides = array<i32>} : memref<2x128xf32, #tpu.memory_space<vmem>>, vector<2x128xf32>,
    return
  }
  func.func @transform_0(%arg0: i32) -> (i32, i32, i32) {
    %c0_i32 = arith.constant 0 : i32
    %c0_i32_0 = arith.constant 0 : i32
    %c0_i32_1 = arith.constant 0 : i32
    return %arg0, %c0_i32, %c0_i32_0 : i32, i32, i32
  }
  func.func @transform_1(%arg0: i32) -> (i32, i32) {
    %c0_i32 = arith.constant 0 : i32
    %c0_i32_0 = arith.constant 0 : i32
    %c0_i32_1 = arith.constant 0 : i32
    return %c0_i32, %c0_i32_0 : i32, i32
  }
  func.func @transform_2(%arg0: i32) -> (i32, i32) {
    %c0_i32 = arith.constant 0 : i32
    %c0_i32_0 = arith.constant 0 : i32
    %c0_i32_1 = arith.constant 0 : i32
    return %c0_i32, %c0_i32_0 : i32, i32
  }
  func.func @transform_3(%arg0: i32) -> (i32, i32) {
    %c0_i32 = arith.constant 0 : i32
    %c0_i32_0 = arith.constant 0 : i32
    return %arg0, %c0_i32 : i32, i32
  }
}

</mosaic_0001>

<bundles_post_ra>
// kernel: tpu_custom_call.1
= control target key start
LH: loop header
LB: loop body
LE: loop exit
PB: predicated region body
PF: predicated region fallthrough
CT: control target
= control target key end

     0   :  { %8 = vsyncpa [#allocation3], 0  ;;  %s254_s0 = inlined_call_operand.hbm [shape: f32[2,4,256], index: 0, kind: input, shape index: {}]   ;;  %s255_s1 = inlined_call_operand.hbm [shape: f32[4,128], index: 1, kind: input, shape index: {}]   ;;  %s256_s2 = inlined_call_operand.vmem [shape: f32[1,128], index: 2, kind: input, shape index: {}]   ;;  %s257_s3 = inlined_call_operand.hbm [shape: f32[2,128], index: 3, kind: output, shape index: {}]  }
   0x1   :  { %9 = vsyncpa [#allocation6], 0 }
   0x2   :  { %10 = vsyncpa [#allocation4], 0  ;;  %s15_s14 = sshll.u32 %s254_s0, 4  ;;  %s217_s15 = smov [#allocation2]   ;;  %s16_s14 = int_to_ptr.hbm [resolvable:$true] %s15_s14 }
   0x3   :  { %s17_s16 = sshll.u32 %s217_s15, 4  ;;  %s29_s19 = sshll.u32 %s255_s1, 4  ;;  %s18_s16 = int_to_ptr.vmem [resolvable:$true] %s17_s16  ;;  %s30_s19 = int_to_ptr.hbm [resolvable:$true] %s29_s19 }
   0x4   :  { %s218_s20 = smov 128   ;;  %s219_s21 = smov 8  }
   0x5   :  { %23 = dma.hbm_to_vmem [thread:$0]  %s16_s14, 256, %s18_s16, [#allocation3], %s218_s20, %s218_s20, %s219_s21  }
   0x6   :  { %s220_s22 = smov [#allocation5]  }
   0x7   :  { %s31_s23 = sshll.u32 %s220_s22, 4  ;;  %s32_s23 = int_to_ptr.vmem [resolvable:$true] %s31_s23 }
   0x8   :  { %34 = dma.hbm_to_vmem [thread:$0]  %s30_s19, 64, %s32_s23, [#allocation6]  }
   0x9   :  { %211 = dma.done.wait [#allocation3], 256  }
   0xa   :  { %212 = vsyncadd [#allocation3], 4294967040 }
   0xb   :  { %213 = dma.done.wait [#allocation6], 64  }
   0xc   :  { %214 = vsyncadd [#allocation6], 4294967232  ;;  %v45_v0 = vld [vmem:[#allocation2] sm:$0xff]  ;;  %v46_v1 = vld [vmem:[#allocation2 + $0x8] sm:$0xff]  ;;  %vm60_vm0 = vcmask 1043456   ;;  %v80_v14 = vlaneseq  ;;  %vm84_vm1 = vcmask 1041409  }
   0xd   :  { %49 = vst [vmem:[#allocation1] ss:$2 sm:$0xff] %v45_v0  ;;  %v73_v12 = vld [vmem:[#allocation5] sm:$0xf]  ;;  %vm86_vm2 = vcmask 31744   ;;  %s221_s24 = smov [#allocation7]  }
   0xe   :  { %53 = vst [vmem:[#allocation1 + $0x10] ss:$2 sm:$0xff] %v46_v1  ;;  %131 = vmatpush.msk.msra.mxu0 %vm60_vm0, %v73_v12  ;;  %v81_v15 = vand.u32 127, %v80_v14  ;;  %v138_v22 = vld [vmem:[%s256_s2] ss:$0 sm:$0xff]  ;;  %s118_s25 = sshll.u32 %s221_s24, 4  ;;  %s119_s25 = int_to_ptr.vmem [resolvable:$true] %s118_s25 }
   0xf   :  { %s120_s28 = sshll.u32 %s257_s3, 4  ;;  %s121_s28 = int_to_ptr.hbm [resolvable:$true] %s120_s28 }
  0x14   :  { %v50_v2 = vld.sshfl [vmem:[#allocation1] sm:$0xff pattern:$0x75316420]  ;;  %v51_v3 = vld.sshfl [vmem:[#allocation1 + $0x8] sm:$0xff pattern:$0x75316420] }
  0x15   :  { %v61_v4 = vsel %vm60_vm0, %v50_v2, 0.0  ;;  %v62_v5 = vsel %vm60_vm0, %v51_v3, 0.0  ;;  %v54_v7 = vld.sshfl [vmem:[#allocation1 + $0x10] sm:$0xff pattern:$0x75316420] }
  0x16   :  { %v63_v6 = vadd.f32 %v62_v5, %v61_v4  ;;  %v55_v8 = vld.sshfl [vmem:[#allocation1 + $0x18] sm:$0xff pattern:$0x75316420]  ;;  %v66_v9 = vsel %vm60_vm0, %v54_v7, 0.0 }
  0x17   :  { %v67_v10 = vsel %vm60_vm0, %v55_v8, 0.0 }
  0x18   :  { %64 = vadd.xlane.f32.xlu0 %v63_v6  ;;  %v68_v11 = vadd.f32 %v67_v10, %v66_v9 }
  0x20   :  { %69 = vadd.xlane.f32.xlu0 %v68_v11 }
  0x8b   :  { %v65_v13 = vpop.xlane.xlu0 %64 }
  0x8c   :  { %v71_v16 = vmul.f32 0.00390625, %v65_v13 }
  0x8e   :  { %v82_v19 = vperm.slane %v71_v16, %v81_v15 }
  0x93   :  { %v70_v17 = vpop.xlane.xlu0 %69 }
  0x94   :  { %v72_v18 = vmul.f32 0.00390625, %v70_v17 }
  0x96   :  { %v83_v20 = vperm.slane %v72_v18, %v81_v15 }
  0x98   :  { %v85_v21 = vsel %vm84_vm1, %v83_v20, %v82_v19 }
  0x99   :  { %132 = vmatmul.msk.f32.vlgmr.msra.gmra.mxu0 %vm86_vm2, %v85_v21 }
 0x116   :  { %v109_v23 = vpop.f32.mrf.mxu0 }
 0x117   :  { %v110_v24 = vadd.f32 %v138_v22, %v109_v23 }
 0x119   :  { %112 = vst [vmem:[#allocation7] sm:$0x3] %v110_v24 }
 0x11a   :  { %123 = dma.vmem_to_hbm [thread:$0]  %s119_s25, 32, %s121_s28, [#allocation4]  }
 0x11b   :  { %215 = dma.done.wait [#allocation4], 32  }
 0x11c   :  { %216 = vsyncadd [#allocation4], 4294967264 }
 0x11d   :  { %128 = vsyncpa [#allocation3], 1 }
 0x11e   :  { %129 = vsyncpa [#allocation6], 1 }
 0x11f   :  { %130 = vsyncpa [#allocation4], 1 }

</bundles_post_ra>
